<compile_context>
chip_gen: v6e
topology: v6e:2x2x1
jax: 0.10.0
libtpu: 0.0.40
codegen_flags: <defaults>
</compile_context>

<pallas_src>
import math

import jax
import jax.numpy as jnp
from jax.experimental import pallas as pl
from jax.experimental.pallas import tpu as pltpu


def make_pe_table(dim: int, max_len: int) -> jnp.ndarray:
    """Deterministic sin/cos table, identical to the PyTorch __init__ (float32)."""
    mid_pos = max_len // 2
    position = (jnp.arange(0, max_len, dtype=jnp.float32) - mid_pos)[:, None]
    div_term = jnp.exp(
        jnp.arange(0, dim, 2, dtype=jnp.float32) * -(math.log(10000.0) / dim))
    pe = jnp.zeros((max_len, dim), dtype=jnp.float32)
    pe = pe.at[:, 0::2].set(jnp.sin(position * div_term))
    pe = pe.at[:, 1::2].set(jnp.cos(position * div_term))
    return pe


def _vmem_capacity_bytes() -> int:
    """Per-core VMEM capacity; conservative (v7x = 64 MiB) if the query fails."""
    try:
        return int(pltpu.get_tpu_info().vmem_capacity_bytes)
    except Exception:
        return 64 * 1024 * 1024


def _choose_l_tile(length: int, block_batch: int, dim: int, itemsize: int,
                   budget_bytes: int) -> int:
    """Sequence rows per grid step.  Multiple of 8 (sublane) unless a single
    full-extent tile covers the whole length.  For big problems keep >= 2
    tiles so 'parallel' can shard across v7x's two TensorCores."""
    row_bytes = max(1, block_batch * dim * itemsize)
    if length * row_bytes <= min(budget_bytes, 2 * 1024 * 1024):
        return length                                   # one full-extent tile
    max_rows = min(budget_bytes // row_bytes, pl.cdiv(length, 2))
    l_tile = max(8, (max_rows // 8) * 8)
    return min(l_tile, length)


def relative_positional_encoding(emb, shift, pe, *,
                                 force_hbm_gather: bool = False,
                                 l_tile=None):
    """emb: [B, L, D], shift: [B] int, pe: [max_len, D].  Returns emb + pe[index]."""
    bsz, length, dim = emb.shape
    max_len, pe_dim = pe.shape
    assert pe_dim == dim and length <= max_len
    mid_pos = max_len // 2
    itemsize = jnp.dtype(emb.dtype).itemsize

    # pe in emb's dtype (bf16 models halve pe traffic).
    # TODO(synk): optionally keep the add in f32 for bf16 emb if bit-parity
    # with PyTorch's f32 pe promotion is required.
    pe = pe.astype(emb.dtype)

    # Per-batch window start row, clamped (TPU DMA/VMEM reads are unchecked).
    # In-range shifts are unchanged; out-of-range shifts diverge from PyTorch.
    start_rows = jnp.clip(mid_pos - shift.astype(jnp.int32),
                          0, max_len - length).astype(jnp.int32)

    # ---- generation-aware budgets -------------------------------------------
    vmem_cap = _vmem_capacity_bytes()            # 128 MiB v5e/v6e, 64 MiB v7x
    vmem_limit = min(int(vmem_cap * 3 // 4), 112 * 1024 * 1024)
    pe_bytes = max_len * dim * itemsize
    resident = (not force_hbm_gather) and (2 * pe_bytes) <= int(0.4 * vmem_limit)

    if resident:
        block_batch = 1                          # per-step emb block (1, l_tile, dim)
        tile_budget = (vmem_limit - 2 * pe_bytes) // 6
    else:
        block_batch = bsz                        # per-step emb block (bsz, l_tile, dim)
        tile_budget = vmem_limit // 10           # emb/out/pe_buf all double-buffered
    tile_budget = int(min(max(tile_budget, 256 * 1024), 16 * 1024 * 1024))

    if l_tile is None:
        l_tile = _choose_l_tile(length, block_batch, dim, itemsize, tile_budget)
    num_l_tiles = pl.cdiv(length, l_tile)

    # Pad pe rows so the last (possibly partial) L tile's window read / DMA
    # stays in bounds: max start row + num_l_tiles * l_tile <= padded rows.
    pad_rows = num_l_tiles * l_tile - length
    if pad_rows:
        pe = jnp.pad(pe, ((0, pad_rows), (0, 0)))
    max_len_pad = max_len + pad_rows

    out_shape = jax.ShapeDtypeStruct((bsz, length, dim), emb.dtype)

    if resident:
        # ---------- fast path: whole pe table resident in VMEM ----------
        def kernel(starts_ref, pe_ref, emb_ref, out_ref):
            b = pl.program_id(0)
            lt = pl.program_id(1)
            row = starts_ref[b] + lt * l_tile
            out_ref[...] = emb_ref[...] + pe_ref[pl.ds(row, l_tile), :]

        grid_spec = pltpu.PrefetchScalarGridSpec(
            num_scalar_prefetch=1,                        # start_rows -> SMEM
            grid=(bsz, num_l_tiles),
            in_specs=[
                # Constant block index -> Pallas fetches the table once and
                # keeps reusing the VMEM buffer (no per-step pe DMA).
                pl.BlockSpec((max_len_pad, dim), lambda b, lt, starts: (0, 0)),
                pl.BlockSpec((None, l_tile, dim), lambda b, lt, starts: (b, lt, 0)),
            ],
            out_specs=pl.BlockSpec((None, l_tile, dim),
                                   lambda b, lt, starts: (b, lt, 0)),
        )
        dim_sem = ("parallel", "parallel")
    else:
        # ---------- fallback: pe in HBM, manual double-buffered gather ----------
        def kernel(starts_ref, pe_hbm, emb_ref, out_ref, pe_buf, sem):
            lt = pl.program_id(0)
            n_lt = pl.num_programs(0)

            def copies(tile_idx, slot):
                cps = []
                for b in range(bsz):
                    row = starts_ref[b] + tile_idx * l_tile
                    cps.append(pltpu.make_async_copy(
                        pe_hbm.at[pl.ds(row, l_tile), :],   # dense (l_tile, dim) window
                        pe_buf.at[slot, b],                 # dense destination
                        sem.at[slot, b]))
                return cps

            # Prime the first tile's windows (grid is "arbitrary" -> step 0 runs first).
            @pl.when(lt == 0)
            def _():
                for cp in copies(0, 0):
                    cp.start()

            slot = lt % 2

            # Prefetch the NEXT tile's windows before waiting on the current
            # ones, so the gather hides behind this step's compute / pipeline.
            @pl.when(lt + 1 < n_lt)
            def _():
                for cp in copies(lt + 1, 1 - slot):
                    cp.start()

            for cp in copies(lt, slot):
                cp.wait()

            out_ref[...] = emb_ref[...] + pe_buf[slot]

        grid_spec = pltpu.PrefetchScalarGridSpec(
            num_scalar_prefetch=1,                        # start_rows -> SMEM
            grid=(num_l_tiles,),
            in_specs=[
                pl.BlockSpec(memory_space=pl.ANY),        # pe stays in HBM
                pl.BlockSpec((bsz, l_tile, dim), lambda lt, starts: (0, lt, 0)),
            ],
            out_specs=pl.BlockSpec((bsz, l_tile, dim), lambda lt, starts: (0, lt, 0)),
            scratch_shapes=[
                pltpu.VMEM((2, bsz, l_tile, dim), emb.dtype),   # double buffer
                pltpu.SemaphoreType.DMA((2, bsz)),
            ],
        )
        dim_sem = ("arbitrary",)   # slot chain / lt==0 priming must run in order

    return pl.pallas_call(
        kernel,
        grid_spec=grid_spec,
        out_shape=out_shape,
        compiler_params=pltpu.CompilerParams(
            dimension_semantics=dim_sem,
            vmem_limit_bytes=vmem_limit),
    )(start_rows, pe, emb)


def reference(emb, shift, pe, mid_pos):
    bsz, length, _ = emb.shape
    index = (jnp.arange(mid_pos, mid_pos + length, dtype=jnp.int32)[None, :]
             - shift[:, None])
    return emb + pe[index]


if __name__ == "__main__":
    key = jax.random.PRNGKey(0)
    k1, k2, k3, k4 = jax.random.split(key, 4)

    fn = jax.jit(relative_positional_encoding,
                 static_argnames=("force_hbm_gather", "l_tile"))

    # --- Test 1: resident-pe fast path (default) -----------------------------
    bsz, length, dim, max_len = 2, 8, 32, 64
    mid_pos = max_len // 2
    emb = jax.random.normal(k1, (bsz, length, dim), dtype=jnp.float32)
    shift = jax.random.randint(k2, (bsz,), minval=-3, maxval=4, dtype=jnp.int32)
    pe = make_pe_table(dim, max_len)

    out = jax.block_until_ready(fn(emb, shift, pe))
    ref = reference(emb, shift, pe, mid_pos)
    assert out.shape == (bsz, length, dim) and out.dtype == emb.dtype
    assert jnp.allclose(out, ref, atol=1e-6), "resident-pe path mismatch"

    # --- Test 2: HBM-gather fallback (forced), non-divisible length ----------
    bsz2, length2 = 2, 20
    emb2 = jax.random.normal(k3, (bsz2, length2, dim), dtype=jnp.float32)
    shift2 = jax.random.randint(k4, (bsz2,), minval=-5, maxval=6, dtype=jnp.int32)
    out2 = jax.block_until_ready(
        fn(emb2, shift2, pe, force_hbm_gather=True, l_tile=8))
    ref2 = reference(emb2, shift2, pe, mid_pos)
    assert jnp.allclose(out2, ref2, atol=1e-6), "hbm-gather path mismatch"

    print("KERNEL_OK")
</pallas_src>

<mosaic_0001>
module attributes {stable_mosaic.version = 11 : i64} {
  func.func @kernel(%arg0: i32, %arg1: i32, %arg2: memref<2xi32, #tpu.memory_space<smem>>, %arg3: memref<64x32xf32, #tpu.memory_space<vmem>>, %arg4: memref<1x8x32xf32, #tpu.memory_space<vmem>>, %arg5: memref<1x8x32xf32, #tpu.memory_space<vmem>>) attributes {dimension_semantics = [#tpu.dimension_semantics<parallel>, #tpu.dimension_semantics<parallel>], iteration_bounds = array<i64: 2, 1>, scalar_prefetch = 1 : i64, scratch_operands = 0 : i64, tpu.core_type = #tpu.core_type<tc>, window_params = [{pipeline_mode = #tpu.pipeline_mode<synchronous>, transform_indices = @transform_0, window_bounds = array<i64: 64, 32>}, {transform_indices = @transform_1, window_bounds = array<i64: 1, 8, 32>}, {transform_indices = @transform_2, window_bounds = array<i64: 1, 8, 32>}]} {
    %0 = arith.index_cast %arg0 : i32 to index
    %1 = memref.load %arg2[%0] : memref<2xi32, #tpu.memory_space<smem>>
    %c8_i32 = arith.constant 8 : i32
    %2 = arith.muli %arg1, %c8_i32 : i32
    %3 = arith.addi %1, %2 : i32
    %c0 = arith.constant 0 : index
    %c0_0 = arith.constant 0 : index
    %c0_1 = arith.constant 0 : index
    %4 = vector.load %arg4[%c0, %c0_0, %c0_1] : memref<1x8x32xf32, #tpu.memory_space<vmem>>, vector<1x8x32xf32>
    %5 = vector.shape_cast %4 : vector<1x8x32xf32> to vector<8x32xf32>
    %6 = arith.index_cast %3 : i32 to index
    %c0_2 = arith.constant 0 : index
    %7 = vector.load %arg3[%6, %c0_2] : memref<64x32xf32, #tpu.memory_space<vmem>>, vector<8x32xf32>
    %8 = arith.addf %5, %7 : vector<8x32xf32>
    %c0_3 = arith.constant 0 : index
    %c0_4 = arith.constant 0 : index
    %c0_5 = arith.constant 0 : index
    %9 = vector.load %arg5[%c0_3, %c0_4, %c0_5] : memref<1x8x32xf32, #tpu.memory_space<vmem>>, vector<1x8x32xf32>
    %10 = vector.shape_cast %9 : vector<1x8x32xf32> to vector<8x32xf32>
    %11 = vector.shape_cast %8 : vector<8x32xf32> to vector<1x8x32xf32>
    tpu.vector_store %arg5[%c0_3, %c0_4, %c0_5], %11 {strides = array<i32>} : memref<1x8x32xf32, #tpu.memory_space<vmem>>, vector<1x8x32xf32>,
    return
  }
  func.func @transform_0(%arg0: i32, %arg1: i32, %arg2: memref<2xi32, #tpu.memory_space<smem>>) -> (i32, i32) {
    %c0_i32 = arith.constant 0 : i32
    %c0_i32_0 = arith.constant 0 : i32
    %c0_i32_1 = arith.constant 0 : i32
    return %c0_i32, %c0_i32_0 : i32, i32
  }
  func.func @transform_1(%arg0: i32, %arg1: i32, %arg2: memref<2xi32, #tpu.memory_space<smem>>) -> (i32, i32, i32) {
    %c0_i32 = arith.constant 0 : i32
    %c0_i32_0 = arith.constant 0 : i32
    return %arg0, %arg1, %c0_i32 : i32, i32, i32
  }
  func.func @transform_2(%arg0: i32, %arg1: i32, %arg2: memref<2xi32, #tpu.memory_space<smem>>) -> (i32, i32, i32) {
    %c0_i32 = arith.constant 0 : i32
    %c0_i32_0 = arith.constant 0 : i32
    return %arg0, %arg1, %c0_i32 : i32, i32, i32
  }
}

</mosaic_0001>

<bundles_post_ra>
// kernel: relative_positional_encoding.1
= control target key start
LH: loop header
LB: loop body
LE: loop exit
PB: predicated region body
PF: predicated region fallthrough
CT: control target
= control target key end

     0   :  { %s556_s0 = inlined_call_operand.vmem [shape: s32[2], index: 0, kind: input, shape index: {}]   ;;  %s557_s1 = inlined_call_operand.vmem [shape: f32[64,32], index: 1, kind: input, shape index: {}]   ;;  %s558_s2 = inlined_call_operand.vmem [shape: f32[2,8,32], index: 2, kind: input, shape index: {}]   ;;  %s559_s3 = inlined_call_operand.hbm [shape: f32[2,8,32], index: 3, kind: output, shape index: {}]  }
   0x1   :  { %s8_s14 = sshll.u32 %s556_s0, 4  ;;  %s9_s14 = int_to_ptr.vmem [resolvable:$true] %s8_s14 }
   0x2   :  { %s336_s15 = scalar_lea.vmem %s9_s14, 16  ;;  %p341_p1 = scmp.lt.s32.totalorder %s9_s14, %s9_s14 }
   0x3   :  { %p337_p0 = scmp.ne.s32.totalorder %s9_s14, %s336_s15  ;;  %p342_p2 = scmp.lt.s32.totalorder %s336_s15, %s336_s15 }
   0x5   :  { %p343_p3 = por %p342_p2, %p341_p1 }
   0x7   :  { %p344_p4 = pnand %p343_p3, %p337_p0 }
   0x9   :  { %347 = shalt.err (!%p344_p4)  }
   0xa   :  { %s428_s16 = smov [#allocation3]  }
   0xb   :  { %11 = dma.vmem_to_smem %s9_s14, 16, %s428_s16, [#allocation2] }
   0xc   :  { %398 = dma.done.wait [#allocation2], 16 }
   0xd   :  { %399 = vsyncadd [#allocation2], 4294967280 }
   0xe   :  { %13 = sfence }
   0xf   :  { %14 = vsyncpa [#allocation5], 0 }
  0x10   :  { %16 = vsyncpa [#allocation5 + $0x1], 0  ;;  %s453_s17 = smov 0   ;;  %s455_s18 = smov 0  }
  0x11   :  { %s457_s0 = smov 0   ;;  %s459_s19 = smov 0  }
  0x12   :  { %s461_s20 = smov 0   ;;  %s463_s21 = smov 0  }
  0x13 LB: > { %s269_s22 = sadd.s32 4294967295, %s426_s21   ;;  %s270_s23 = sadd.s32 4294967294, %s426_s21   ;;  %s426_s21 = sphi %s463_s21, %s22_s21   ;;  %s422_s20 = sphi %s461_s20, %s566_s20   ;;  %s418_s19 = sphi %s459_s19, %s565_s19   ;;  %s414_s0 = sphi %s457_s0, %s564_s0   ;;  %s410_s18 = sphi %s455_s18, %s563_s18   ;;  %s406_s17 = sphi %s453_s17, %s562_s17  }
  0x14   : > { %s34_s24 = sadd.s32 1, %s422_s20  ;;  %s92_s25 = sadd.s32 1, %s414_s0 }
  0x15   : > { %p36_p5 = scmp.ge.s32.totalorder %s34_s24, 2  ;;  %p102_p6 = scmp.ne.s32.totalorder %s414_s0, %s410_s18 }
  0x16   : > { %p103_p7 = scmp.eq.s32.totalorder %s269_s22, 1  ;;  %p108_p8 = scmp.ne.s32.totalorder %s410_s18, %s406_s17 }
  0x17   : > { %s568_s24 = smov (%p36_p5, %s34_s24), 0  ;;  %p109_p10 = scmp.eq.s32.totalorder %s270_s23, 1 }
  0x18   : > { %p493_p9 = por %p103_p7, %p102_p6  ;;  %s87_s27 = ssub.s32 %s422_s20, %s568_s24 }
  0x19   : > { %p273_p11 = scmp.ge.s32.totalorder %s426_s21, 1  ;;  %p90_p12 = scmp.eq.s32.totalorder %s87_s27, 0 }
  0x1a   : > { %p500_p13 = por %p109_p10, %p108_p8  ;;  %p140_p0 = scmp.lt.s32.totalorder %s426_s21, 3 }
  0x1b   : > { %s506_s29 = scalar_select %p90_p12, %s414_s0, %s92_s25  }
  0x1c   : > { %p141_p1 = pnand %p273_p11, %p140_p0 }
  0x1d   : > { %s161_s30 = sand.u32 (!%p141_p1), 1, %s410_s18   ;;  %p164_p2 = scmp.lt.s32.totalorder (!%p141_p1), %s418_s19, 1 }
  0x1e   : > { %144 = sbr.rel (%p141_p1) target bundleno = 59 (0x3b), region = 28  ;;  %s274_s4 = sshll.u32 (!%p141_p1), %s161_s30, 3 }
  0x1f   : > { %s171_s5 = sld [smem:[#allocation3 + %s418_s19]] (!%p141_p1)  ;;  %s163_s8 = scalar_lea.vmem (!%p141_p1), [#allocation4], %s274_s4 }
  0x20   : > { %s195_s9 = sshll.u32 (!%p141_p1), %s163_s8, 4  ;;  %s277_s13 = sshll.u32 (!%p141_p1), %s418_s19, 7  ;;  %s196_s9 = int_to_ptr.vmem [resolvable:$true] %s195_s9 }
  0x21   : > { %s193_s25 = scalar_lea.hbm (!%p141_p1), %s559_s3, %s277_s13  ;;  %s181_s27 = scalar_lea.sflag (!%p141_p1), [#allocation5], %s161_s30 }
  0x22   : > { %s348_s4 = scalar_lea.vmem (!%p141_p1), %s196_s9, 128 }
  0x23   : > { %s165_s6 = scalar_select %p164_p2, %s418_s19, 1  ;;  %vm178_vm0 = vcmask 261120  }
  0x24   : > { %p349_p3 = scmp.ne.s32.totalorder %s196_s9, %s348_s4  ;;  %s429_s19 = smov [#allocation4]  }
  0x25   : > { %s275_s7 = sshll.u32 %s165_s6, 3  ;;  %s175_s16 = scalar_lea.vmem %s557_s1, %s171_s5 }
  0x26   : > { %s170_s12 = scalar_lea.vmem %s558_s2, %s275_s7  ;;  %v176_v1 = vld [vmem:[%s175_s16] sm:$0xff]  ;;  %p350_p4 = pnand %p349_p3, %p493_p9 }
  0x27   : > { %v174_v0 = vld [vmem:[%s170_s12] sm:$0xff]  ;;  %s352_s6 = sshll.u32 %s429_s19, 4  ;;  %s353_s6 = int_to_ptr.vmem [resolvable:$false] %s352_s6 }
  0x28   : > { %v177_v2 = vadd.f32 %v176_v1, %v174_v0  ;;  %p351_p5 = pneg %p350_p4  ;;  %s354_s7 = scalar_lea.vmem %s353_s6, 256 }
  0x29   : > { %p355_p6 = scmp.lt.s32.totalorder %s196_s9, %s353_s6  ;;  %p356_p7 = scmp.lt.s32.totalorder %s354_s7, %s348_s4 }
  0x2a   : > { %179 = vst.msk [vmem:[%s163_s8] sm:$0xff] %vm178_vm0, %v177_v2 }
  0x2b   : > { %p357_p8 = por %p356_p7, %p355_p6 }
  0x2d   : > { %p358_p10 = pnand %p357_p8, %p351_p5 }
  0x2f   : > { %361 = shalt.err (!%p358_p10)
}
  0x30   : > { %s362_s5 = scalar_lea.hbm %s193_s25, 128  ;;  %s366_s10 = scalar_lea.hbm %s559_s3, 256 }
  0x31   : > { %p363_p11 = scmp.ne.s32.totalorder %s193_s25, %s362_s5  ;;  %p367_p1 = scmp.lt.s32.totalorder %s193_s25, %s559_s3 }
  0x32   : > { %p368_p2 = scmp.lt.s32.totalorder %s366_s10, %s362_s5 }
  0x33   : > { %p364_p12 = pnand %p363_p11, %p493_p9 }
  0x34   : > { %p369_p3 = por %p368_p2, %p367_p1 }
  0x35   : > { %p365_p0 = pneg %p364_p12 }
  0x37   : > { %p370_p4 = pnand %p369_p3, %p365_p0 }
  0x39   : > { %373 = shalt.err (!%p370_p4)
}
  0x3a   : > { %280 = dma.vmem_to_hbm [thread:$0]  (%p493_p9), %s196_s9, 128, %s193_s25, %s181_s27  }
  0x3b PF: > { %p286_p5 = scmp.ge.s32.totalorder %s426_s21, 2  ;;  %s207_s13 = sand.u32 1, %s406_s17  }
  0x3c   : > { %s208_s14 = scalar_lea.sflag [#allocation5], %s207_s13 }
  0x3d   : > { %p283_p6 = pnand %p286_p5, %p500_p13 }
  0x3f   : > { %p284_p7 = pneg %p283_p6 }
  0x41   : > { %401 = dma.done.wait (%p284_p7), %s208_s14, 128  }
  0x42   : > { %403 = vsyncadd (%p284_p7), %s208_s14, 4294967168  ;;  %s22_s21 = sadd.s32 1, %s426_s21   ;;  %s562_s17 = smov %s410_s18 }
  0x43   : > { %p19_p8 = scmp.ge.s32.totalorder %s22_s21, 4   ;;  %s563_s18 = smov %s414_s0 }
  0x44   : > { %s564_s0 = smov %s506_s29  ;;  %s565_s19 = smov %s422_s20 }
  0x45   : > { %s566_s20 = smov %s568_s24  ;;  %21 = sbr.rel (!%p19_p8) target bundleno = 19 (0x13), region = 64 }
  0x4a   :  { %213 = vsyncpa [#allocation5], 1 }
  0x4b   :  { %215 = vsyncpa [#allocation5 + $0x1], 1 }

</bundles_post_ra>
